<compile_context>
chip_gen: v7x
topology: tpu7x:2x2x1
jax: 0.10.0
libtpu: 0.0.40
codegen_flags: <defaults>
</compile_context>

<pallas_src>
import functools

import numpy as np
import jax
import jax.numpy as jnp
from jax import lax
from jax.experimental import pallas as pl
from jax.experimental.pallas import tpu as pltpu

NEG_SLOPE = 0.3
BN_EPS = 1e-5
# Perf review: HIGHEST is a multi-pass bf16 decomposition on every MXU
# generation; DEFAULT uses the native bf16 datapath with f32 accumulation.
MATMUL_PREC = lax.Precision.DEFAULT


def _residual_block_kernel(L, T, downsample, *refs):
    """One (batch, time-tile) grid point.

    x_ref[p, c, j] holds x[c, 3*(a + j) + p] with a = t*T the tile's first
    phase-column.  xl_ref / xr_ref are the 128-column neighbour blocks, used
    only for their boundary column (the k=3 conv halo).
    """
    if downsample:
        (x_ref, xl_ref, xr_ref, w1_ref, b1_ref, w2_ref, b2_ref,
         wd_ref, bd_ref, o_ref) = refs
    else:
        (x_ref, xl_ref, xr_ref, w1_ref, b1_ref, w2_ref, b2_ref, o_ref) = refs

    Cin = x_ref.shape[1]
    Cout = o_ref.shape[0]
    t = pl.program_id(1)
    a = t * T                       # first phase-column of this tile (scalar)
    is_first = t == 0

    def mm(w, v):                   # (M, K) @ (K, T) on the MXU, f32 accumulate
        return jnp.dot(w, v, preferred_element_type=jnp.float32,
                       precision=MATMUL_PREC)

    def lrelu(v):                   # LeakyReLU(0.3); valid since slope < 1
        return jnp.maximum(v, NEG_SLOPE * v)

    # ---- tile + halo columns -------------------------------------------------
    X = x_ref[...]                  # (3, Cin, T)
    X0, X1, X2 = X[0], X[1], X[2]
    # Left halo: phase columns a-1.  On the first tile the halo block is clamped
    # (wrong data), but there the fill must be conv's left zero padding anyway.
    xl1 = jnp.where(is_first, 0.0, xl_ref[1, :, 127:128])    # X1[a-1]  (Cin,1)
    xl2 = jnp.where(is_first, 0.0, xl_ref[2, :, 127:128])    # X2[a-1]
    # Right halo: phase columns a+T (array is zero past the sequence end, which
    # is exactly conv1's right zero padding -> no masking needed).
    xr0 = xr_ref[0, :, 0:1]                                   # X0[a+T]
    xr1 = xr_ref[1, :, 0:1]                                   # X1[a+T]

    w1 = w1_ref[...]                # (Cout, 3*Cin)  taps fused along K, bn2 folded
    b1 = b1_ref[...]                # (Cout, 1)
    w2 = w2_ref[...]                # (Cout, 3*Cout)
    b2 = b2_ref[...]

    # ---- conv1 (+folded bn2) + LeakyReLU: one K=3*Cin matmul per output phase
    #   h[3j+0] = k0.x[3j-1] + k1.x[3j]   + k2.x[3j+1]
    #   h[3j+1] = k0.x[3j]   + k1.x[3j+1] + k2.x[3j+2]
    #   h[3j+2] = k0.x[3j+1] + k1.x[3j+2] + k2.x[3j+3]
    X2m = jnp.concatenate([xl2, X2[:, :T - 1]], axis=1)       # X2 shifted right
    X0p = jnp.concatenate([X0[:, 1:], xr0], axis=1)           # X0 shifted left
    cat0 = jnp.concatenate([X2m, X0, X1], axis=0)             # (3*Cin, T)
    cat1 = jnp.concatenate([X0, X1, X2], axis=0)
    cat2 = jnp.concatenate([X1, X2, X0p], axis=0)
    pre = [mm(w1, cat0) + b1, mm(w1, cat1) + b1, mm(w1, cat2) + b1]

    # Zero h[t'] for t' >= L: conv2's right zero padding; also keeps padded
    # columns inert.  3*(a+j) computed once and reused for the three phases.
    g3 = 3 * a + 3 * lax.broadcasted_iota(jnp.int32, (Cout, T), 1)
    H = [jnp.where(g3 + p < L, lrelu(pre[p]), 0.0) for p in range(3)]

    # Boundary h columns for conv2's stencil across the tile edge:
    #   left fill  = h[3a-1]   = H2[a-1],   right fill = h[3(a+T)] = H0[a+T].
    hl_in = jnp.concatenate([xl1, xl2, X0[:, 0:1]], axis=0)   # [X1[a-1];X2[a-1];X0[a]]
    hl = lrelu(mm(w1, hl_in) + b1)
    hl = jnp.where(jnp.logical_or(is_first, 3 * a - 1 >= L), 0.0, hl)
    hr_in = jnp.concatenate([X2[:, T - 1:T], xr0, xr1], axis=0)  # [X2[a+T-1];X0[a+T];X1[a+T]]
    hr = lrelu(mm(w1, hr_in) + b1)
    hr = jnp.where(3 * (a + T) >= L, 0.0, hr)

    # ---- conv2: same fused polyphase stencil applied to h ---------------------
    H2m = jnp.concatenate([hl, H[2][:, :T - 1]], axis=1)
    H0p = jnp.concatenate([H[0][:, 1:], hr], axis=1)
    hcat0 = jnp.concatenate([H2m, H[0], H[1]], axis=0)        # (3*Cout, T)
    hcat1 = jnp.concatenate([H[0], H[1], H[2]], axis=0)
    hcat2 = jnp.concatenate([H[1], H[2], H0p], axis=0)
    O = [mm(w2, hcat0) + b2, mm(w2, hcat1) + b2, mm(w2, hcat2) + b2]

    # ---- identity path: plain skip, or 1x1 conv when channel counts differ ----
    if downsample:
        wd = wd_ref[...]                                      # (Cout, Cin)
        bd = bd_ref[...]                                      # (Cout, 1)
        R = [O[p] + mm(wd, X[p]) + bd for p in range(3)]
    else:
        R = [O[0] + X0, O[1] + X1, O[2] + X2]

    # ---- MaxPool1d(kernel=3, stride=3): elementwise max over the three phases
    o_ref[...] = jnp.maximum(jnp.maximum(R[0], R[1]), R[2])


def residual_block_forward(x, params, *, downsample, lane_tile=512):
    """x: (N, Cin, L) float32 (PyTorch NCL).  Returns (N, Cout, L // 3)."""
    N, Cin, L = x.shape
    Cout = params["conv1_w"].shape[0]
    if not downsample:
        assert Cin == Cout, "plain skip connection requires matching channel counts"
    Lp = L // 3                                    # MaxPool1d(3) floor semantics
    assert Lp >= 1, "sequence too short for MaxPool1d(3)"

    # Time tiling: T phase-columns (= 3*T samples) per grid step, 128-lane aligned.
    T = max(128, (lane_tile // 128) * 128)
    T = min(T, -(-Lp // 128) * 128)                # no bigger than the output needs
    n_t = -(-Lp // T)                              # number of time tiles
    # +128 zero columns on the right so the last tile's right-halo block exists.
    cols = n_t * T + 128
    assert cols >= -(-L // 3)                      # all real samples fit

    # ---- glue: polyphase split + lane padding (layout only, no compute).
    xf = x.astype(jnp.float32)
    xf = jnp.pad(xf, ((0, 0), (0, 0), (0, 3 * cols - L)))
    x_ph = jnp.transpose(xf.reshape(N, Cin, cols, 3), (0, 3, 1, 2))   # (N,3,Cin,cols)

    # ---- fold bn2 (inference running stats) into conv1; fuse taps along K.
    scale = params["bn2_gamma"] * lax.rsqrt(params["bn2_var"] + BN_EPS)
    shift = params["bn2_beta"] - params["bn2_mean"] * scale
    w1 = params["conv1_w"] * scale[:, None, None]                     # (Cout, Cin, 3)
    w1f = jnp.transpose(w1, (0, 2, 1)).reshape(Cout, 3 * Cin)         # [k0 | k1 | k2]
    b1 = (params["conv1_b"] * scale + shift).reshape(Cout, 1)
    w2f = jnp.transpose(params["conv2_w"], (0, 2, 1)).reshape(Cout, 3 * Cout)
    b2 = params["conv2_b"].reshape(Cout, 1)

    tb = T // 128                                  # 128-blocks per tile
    inputs = [x_ph, x_ph, x_ph, w1f, b1, w2f, b2]
    in_specs = [
        # main tile (batch dim squeezed)
        pl.BlockSpec((None, 3, Cin, T), lambda n, t: (n, 0, 0, t)),
        # left halo: previous 128-column block (clamped + masked on the first tile)
        pl.BlockSpec((None, 3, Cin, 128),
                     lambda n, t: (n, 0, 0, jnp.maximum(t * tb - 1, 0))),
        # right halo: next 128-column block (always in range thanks to +128 pad)
        pl.BlockSpec((None, 3, Cin, 128),
                     lambda n, t: (n, 0, 0, t * tb + tb)),
        pl.BlockSpec((Cout, 3 * Cin), lambda n, t: (0, 0)),
        pl.BlockSpec((Cout, 1), lambda n, t: (0, 0)),
        pl.BlockSpec((Cout, 3 * Cout), lambda n, t: (0, 0)),
        pl.BlockSpec((Cout, 1), lambda n, t: (0, 0)),
    ]
    if downsample:
        wd = params["convds_w"][:, :, 0]                              # (Cout, Cin)
        bd = params["convds_b"].reshape(Cout, 1)
        inputs += [wd, bd]
        in_specs += [pl.BlockSpec((Cout, Cin), lambda n, t: (0, 0)),
                     pl.BlockSpec((Cout, 1), lambda n, t: (0, 0))]

    kernel = functools.partial(_residual_block_kernel, L, T, downsample)

    # Output is written directly at its final shape; the ragged last time tile
    # is a masked store, so no post-kernel slice (extra HBM pass) is needed.
    return pl.pallas_call(
        kernel,
        out_shape=jax.ShapeDtypeStruct((N, Cout, Lp), jnp.float32),
        grid=(N, n_t),
        in_specs=in_specs,
        out_specs=pl.BlockSpec((None, Cout, T), lambda n, t: (n, 0, t)),
        compiler_params=pltpu.CompilerParams(
            dimension_semantics=("parallel", "parallel"),
            vmem_limit_bytes=32 * 1024 * 1024),
    )(*inputs)


def init_params(key, nb_filts):
    """Deterministic synthetic parameters matching Residual_block.__init__ shapes."""
    Cin, Cout = nb_filts
    ks = jax.random.split(key, 10)

    def u(k, shape, scl):
        return jax.random.uniform(k, shape, jnp.float32, -1.0, 1.0) * scl

    params = {
        "conv1_w": u(ks[0], (Cout, Cin, 3), 0.3),
        "conv1_b": u(ks[1], (Cout,), 0.1),
        "bn2_gamma": 1.0 + u(ks[2], (Cout,), 0.1),
        "bn2_beta": u(ks[3], (Cout,), 0.1),
        "bn2_mean": u(ks[4], (Cout,), 0.1),
        "bn2_var": jnp.abs(u(ks[5], (Cout,), 0.5)) + 0.5,
        "conv2_w": u(ks[6], (Cout, Cout, 3), 0.3),
        "conv2_b": u(ks[7], (Cout,), 0.1),
    }
    if Cin != Cout:
        params["convds_w"] = u(ks[8], (Cout, Cin, 1), 0.3)
        params["convds_b"] = u(ks[9], (Cout,), 0.1)
    return params


def reference_forward(x, params, *, downsample):
    """Pure-JAX reference of the (effective) PyTorch forward, inference-mode BN."""
    def conv1d(inp, w, b, pad):
        y = lax.conv_general_dilated(
            inp, w, window_strides=(1,), padding=[(pad, pad)],
            dimension_numbers=("NCH", "OIH", "NCH"),
            precision=lax.Precision.HIGHEST)
        return y + b[None, :, None]

    out = conv1d(x, params["conv1_w"], params["conv1_b"], 1)
    scale = params["bn2_gamma"] / jnp.sqrt(params["bn2_var"] + BN_EPS)
    shift = params["bn2_beta"] - params["bn2_mean"] * scale
    out = out * scale[None, :, None] + shift[None, :, None]
    out = jnp.where(out >= 0, out, NEG_SLOPE * out)
    out = conv1d(out, params["conv2_w"], params["conv2_b"], 1)
    identity = x
    if downsample:
        identity = conv1d(x, params["convds_w"], params["convds_b"], 0)
    out = out + identity
    N, C, Lo = out.shape
    Lp = Lo // 3
    return jnp.max(out[:, :, :3 * Lp].reshape(N, C, Lp, 3), axis=-1)


if __name__ == "__main__":
    key = jax.random.PRNGKey(0)

    # Channel counts kept multiples of 8 so the in-kernel sublane concats stay
    # aligned (arbitrary counts are still correct, just slightly slower).
    cases = [
        ([8, 16], 2, 600, 128),    # downsample, 2 time tiles (halo across tiles)
        ([16, 16], 2, 1000, 512),  # plain skip, L % 3 == 1, single time tile
        ([8, 8], 2, 770, 128),     # L % 3 == 2, pooled edge lands on a tile boundary
    ]
    for i, (nb_filts, N, L, lane_tile) in enumerate(cases):
        kx, kp = jax.random.split(jax.random.fold_in(key, i))
        downsample = nb_filts[0] != nb_filts[1]
        x = jax.random.normal(kx, (N, nb_filts[0], L), jnp.float32)
        params = init_params(kp, nb_filts)

        out = residual_block_forward(x, params, downsample=downsample,
                                     lane_tile=lane_tile)
        out = jax.block_until_ready(out)

        ref = reference_forward(x, params, downsample=downsample)
        # DEFAULT (bf16-pass) matmul precision in the kernel vs f32 reference:
        # tolerance loosened accordingly (values are O(1)).
        np.testing.assert_allclose(np.asarray(out), np.asarray(ref),
                                   rtol=5e-2, atol=5e-2)

    print("KERNEL_OK")
</pallas_src>

<mosaic_0001>
module attributes {stable_mosaic.version = 11 : i64} {
  func.func @_residual_block_kernel(%arg0: i32, %arg1: i32, %arg2: memref<1x3x8x128xf32, #tpu.memory_space<vmem>>, %arg3: memref<1x3x8x128xf32, #tpu.memory_space<vmem>>, %arg4: memref<1x3x8x128xf32, #tpu.memory_space<vmem>>, %arg5: memref<16x24xf32, #tpu.memory_space<vmem>>, %arg6: memref<16x1xf32, #tpu.memory_space<vmem>>, %arg7: memref<16x48xf32, #tpu.memory_space<vmem>>, %arg8: memref<16x1xf32, #tpu.memory_space<vmem>>, %arg9: memref<16x8xf32, #tpu.memory_space<vmem>>, %arg10: memref<16x1xf32, #tpu.memory_space<vmem>>, %arg11: memref<1x16x128xf32, #tpu.memory_space<vmem>>) attributes {dimension_semantics = [#tpu.dimension_semantics<parallel>, #tpu.dimension_semantics<parallel>], iteration_bounds = array<i64: 2, 2>, scalar_prefetch = 0 : i64, scratch_operands = 0 : i64, tpu.core_type = #tpu.core_type<tc>, window_params = [{transform_indices = @transform_0, window_bounds = array<i64: 1, 3, 8, 128>}, {transform_indices = @transform_1, window_bounds = array<i64: 1, 3, 8, 128>}, {transform_indices = @transform_2, window_bounds = array<i64: 1, 3, 8, 128>}, {pipeline_mode = #tpu.pipeline_mode<synchronous>, transform_indices = @transform_3, window_bounds = array<i64: 16, 24>}, {pipeline_mode = #tpu.pipeline_mode<synchronous>, transform_indices = @transform_4, window_bounds = array<i64: 16, 1>}, {pipeline_mode = #tpu.pipeline_mode<synchronous>, transform_indices = @transform_5, window_bounds = array<i64: 16, 48>}, {pipeline_mode = #tpu.pipeline_mode<synchronous>, transform_indices = @transform_6, window_bounds = array<i64: 16, 1>}, {pipeline_mode = #tpu.pipeline_mode<synchronous>, transform_indices = @transform_7, window_bounds = array<i64: 16, 8>}, {pipeline_mode = #tpu.pipeline_mode<synchronous>, transform_indices = @transform_8, window_bounds = array<i64: 16, 1>}, {transform_indices = @transform_9, window_bounds = array<i64: 1, 16, 128>}]} {
    %c128_i32 = arith.constant 128 : i32
    %0 = arith.muli %arg1, %c128_i32 : i32
    %c0_i32 = arith.constant 0 : i32
    %1 = arith.cmpi eq, %arg1, %c0_i32 : i32
    %c0 = arith.constant 0 : index
    %c0_0 = arith.constant 0 : index
    %c0_1 = arith.constant 0 : index
    %c0_2 = arith.constant 0 : index
    %2 = vector.load %arg2[%c0, %c0_0, %c0_1, %c0_2] : memref<1x3x8x128xf32, #tpu.memory_space<vmem>>, vector<1x3x8x128xf32>
    %3 = vector.shape_cast %2 : vector<1x3x8x128xf32> to vector<3x8x128xf32>
    %4 = vector.extract_strided_slice %3 {offsets = [0, 0, 0], sizes = [1, 8, 128], strides = [1, 1, 1]} : vector<3x8x128xf32> to vector<1x8x128xf32>
    %5 = vector.shape_cast %4 : vector<1x8x128xf32> to vector<8x128xf32>
    %6 = vector.extract_strided_slice %3 {offsets = [1, 0, 0], sizes = [1, 8, 128], strides = [1, 1, 1]} : vector<3x8x128xf32> to vector<1x8x128xf32>
    %7 = vector.shape_cast %6 : vector<1x8x128xf32> to vector<8x128xf32>
    %8 = vector.extract_strided_slice %3 {offsets = [2, 0, 0], sizes = [1, 8, 128], strides = [1, 1, 1]} : vector<3x8x128xf32> to vector<1x8x128xf32>
    %9 = vector.shape_cast %8 : vector<1x8x128xf32> to vector<8x128xf32>
    %c0_3 = arith.constant 0 : index
    %c1 = arith.constant 1 : index
    %c0_4 = arith.constant 0 : index
    %c127 = arith.constant 127 : index
    %10 = vector.load %arg3[%c0_3, %c1, %c0_4, %c127] : memref<1x3x8x128xf32, #tpu.memory_space<vmem>>, vector<1x1x8x1xf32>
    %11 = vector.shape_cast %10 : vector<1x1x8x1xf32> to vector<8x1xf32>
    %cst = arith.constant 0.000000e+00 : f32
    %12 = vector.broadcast %cst : f32 to vector<8x1xf32>
    %13 = arith.select %1, %12, %11 : vector<8x1xf32>
    %c0_5 = arith.constant 0 : index
    %c2 = arith.constant 2 : index
    %c0_6 = arith.constant 0 : index
    %c127_7 = arith.constant 127 : index
    %14 = vector.load %arg3[%c0_5, %c2, %c0_6, %c127_7] : memref<1x3x8x128xf32, #tpu.memory_space<vmem>>, vector<1x1x8x1xf32>
    %15 = vector.shape_cast %14 : vector<1x1x8x1xf32> to vector<8x1xf32>
    %cst_8 = arith.constant 0.000000e+00 : f32
    %16 = vector.broadcast %cst_8 : f32 to vector<8x1xf32>
    %17 = arith.select %1, %16, %15 : vector<8x1xf32>
    %c0_9 = arith.constant 0 : index
    %c0_10 = arith.constant 0 : index
    %c0_11 = arith.constant 0 : index
    %c0_12 = arith.constant 0 : index
    %18 = vector.load %arg4[%c0_9, %c0_10, %c0_11, %c0_12] : memref<1x3x8x128xf32, #tpu.memory_space<vmem>>, vector<1x1x8x1xf32>
    %19 = vector.shape_cast %18 : vector<1x1x8x1xf32> to vector<8x1xf32>
    %c0_13 = arith.constant 0 : index
    %c1_14 = arith.constant 1 : index
    %c0_15 = arith.constant 0 : index
    %c0_16 = arith.constant 0 : index
    %20 = vector.load %arg4[%c0_13, %c1_14, %c0_15, %c0_16] : memref<1x3x8x128xf32, #tpu.memory_space<vmem>>, vector<1x1x8x1xf32>
    %21 = vector.shape_cast %20 : vector<1x1x8x1xf32> to vector<8x1xf32>
    %c0_17 = arith.constant 0 : index
    %c0_18 = arith.constant 0 : index
    %22 = vector.load %arg5[%c0_17, %c0_18] : memref<16x24xf32, #tpu.memory_space<vmem>>, vector<16x24xf32>
    %c0_19 = arith.constant 0 : index
    %c0_20 = arith.constant 0 : index
    %23 = vector.load %arg6[%c0_19, %c0_20] : memref<16x1xf32, #tpu.memory_space<vmem>>, vector<16x1xf32>
    %c0_21 = arith.constant 0 : index
    %c0_22 = arith.constant 0 : index
    %24 = vector.load %arg7[%c0_21, %c0_22] : memref<16x48xf32, #tpu.memory_space<vmem>>, vector<16x48xf32>
    %c0_23 = arith.constant 0 : index
    %c0_24 = arith.constant 0 : index
    %25 = vector.load %arg8[%c0_23, %c0_24] : memref<16x1xf32, #tpu.memory_space<vmem>>, vector<16x1xf32>
    %26 = vector.extract_strided_slice %9 {offsets = [0, 0], sizes = [8, 127], strides = [1, 1]} : vector<8x128xf32> to vector<8x127xf32>
    %27 = tpu.concatenate %17, %26 in 1 : vector<8x1xf32>, vector<8x127xf32> -> vector<8x128xf32>
    %28 = vector.extract_strided_slice %5 {offsets = [0, 1], sizes = [8, 127], strides = [1, 1]} : vector<8x128xf32> to vector<8x127xf32>
    %29 = tpu.concatenate %28, %19 in 1 : vector<8x127xf32>, vector<8x1xf32> -> vector<8x128xf32>
    %30 = tpu.concatenate %27, %5, %7 in 0 : vector<8x128xf32>, vector<8x128xf32>, vector<8x128xf32> -> vector<24x128xf32>
    %31 = tpu.concatenate %5, %7, %9 in 0 : vector<8x128xf32>, vector<8x128xf32>, vector<8x128xf32> -> vector<24x128xf32>
    %32 = tpu.concatenate %7, %9, %29 in 0 : vector<8x128xf32>, vector<8x128xf32>, vector<8x128xf32> -> vector<24x128xf32>
    %cst_25 = arith.constant dense<0.000000e+00> : vector<16x128xf32>
    %33 = tpu.matmul %22, %30, %cst_25 {dimension_numbers = #tpu.dot_dimension_numbers<[1], [0], [0], [1], [0, 0, 1, 1], [], []>} : vector<16x24xf32>, vector<24x128xf32>, vector<16x128xf32> -> vector<16x128xf32>
    %34 = vector.broadcast %23 : vector<16x1xf32> to vector<16x128xf32>
    %35 = arith.addf %33, %34 : vector<16x128xf32>
    %cst_26 = arith.constant dense<0.000000e+00> : vector<16x128xf32>
    %36 = tpu.matmul %22, %31, %cst_26 {dimension_numbers = #tpu.dot_dimension_numbers<[1], [0], [0], [1], [0, 0, 1, 1], [], []>} : vector<16x24xf32>, vector<24x128xf32>, vector<16x128xf32> -> vector<16x128xf32>
    %37 = vector.broadcast %23 : vector<16x1xf32> to vector<16x128xf32>
    %38 = arith.addf %36, %37 : vector<16x128xf32>
    %cst_27 = arith.constant dense<0.000000e+00> : vector<16x128xf32>
    %39 = tpu.matmul %22, %32, %cst_27 {dimension_numbers = #tpu.dot_dimension_numbers<[1], [0], [0], [1], [0, 0, 1, 1], [], []>} : vector<16x24xf32>, vector<24x128xf32>, vector<16x128xf32> -> vector<16x128xf32>
    %40 = vector.broadcast %23 : vector<16x1xf32> to vector<16x128xf32>
    %41 = arith.addf %39, %40 : vector<16x128xf32>
    %c3_i32 = arith.constant 3 : i32
    %42 = arith.muli %c3_i32, %0 : i32
    %43 = tpu.iota {dimensions = array<i32: 1>} : vector<16x128xi32>
    %c3_i32_28 = arith.constant 3 : i32
    %44 = vector.broadcast %c3_i32_28 : i32 to vector<16x128xi32>
    %45 = arith.muli %44, %43 : vector<16x128xi32>
    %46 = vector.broadcast %42 : i32 to vector<16x128xi32>
    %47 = arith.addi %46, %45 : vector<16x128xi32>
    %c0_i32_29 = arith.constant 0 : i32
    %48 = vector.broadcast %c0_i32_29 : i32 to vector<16x128xi32>
    %49 = arith.addi %47, %48 : vector<16x128xi32>
    %c600_i32 = arith.constant 600 : i32
    %50 = vector.broadcast %c600_i32 : i32 to vector<16x128xi32>
    %51 = arith.cmpi slt, %49, %50 : vector<16x128xi32>
    %cst_30 = arith.constant 3.000000e-01 : f32
    %52 = vector.broadcast %cst_30 : f32 to vector<16x128xf32>
    %53 = arith.mulf %52, %35 : vector<16x128xf32>
    %54 = arith.maximumf %35, %53 : vector<16x128xf32>
    %cst_31 = arith.constant 0.000000e+00 : f32
    %55 = vector.broadcast %cst_31 : f32 to vector<16x128xf32>
    %56 = arith.select %51, %54, %55 : vector<16x128xi1>, vector<16x128xf32>
    %c1_i32 = arith.constant 1 : i32
    %57 = vector.broadcast %c1_i32 : i32 to vector<16x128xi32>
    %58 = arith.addi %47, %57 : vector<16x128xi32>
    %c600_i32_32 = arith.constant 600 : i32
    %59 = vector.broadcast %c600_i32_32 : i32 to vector<16x128xi32>
    %60 = arith.cmpi slt, %58, %59 : vector<16x128xi32>
    %cst_33 = arith.constant 3.000000e-01 : f32
    %61 = vector.broadcast %cst_33 : f32 to vector<16x128xf32>
    %62 = arith.mulf %61, %38 : vector<16x128xf32>
    %63 = arith.maximumf %38, %62 : vector<16x128xf32>
    %cst_34 = arith.constant 0.000000e+00 : f32
    %64 = vector.broadcast %cst_34 : f32 to vector<16x128xf32>
    %65 = arith.select %60, %63, %64 : vector<16x128xi1>, vector<16x128xf32>
    %c2_i32 = arith.constant 2 : i32
    %66 = vector.broadcast %c2_i32 : i32 to vector<16x128xi32>
    %67 = arith.addi %47, %66 : vector<16x128xi32>
    %c600_i32_35 = arith.constant 600 : i32
    %68 = vector.broadcast %c600_i32_35 : i32 to vector<16x128xi32>
    %69 = arith.cmpi slt, %67, %68 : vector<16x128xi32>
    %cst_36 = arith.constant 3.000000e-01 : f32
    %70 = vector.broadcast %cst_36 : f32 to vector<16x128xf32>
    %71 = arith.mulf %70, %41 : vector<16x128xf32>
    %72 = arith.maximumf %41, %71 : vector<16x128xf32>
    %cst_37 = arith.constant 0.000000e+00 : f32
    %73 = vector.broadcast %cst_37 : f32 to vector<16x128xf32>
    %74 = arith.select %69, %72, %73 : vector<16x128xi1>, vector<16x128xf32>
    %75 = vector.extract_strided_slice %5 {offsets = [0, 0], sizes = [8, 1], strides = [1, 1]} : vector<8x128xf32> to vector<8x1xf32>
    %76 = tpu.concatenate %13, %17, %75 in 0 : vector<8x1xf32>, vector<8x1xf32>, vector<8x1xf32> -> vector<24x1xf32>
    %cst_38 = arith.constant dense<0.000000e+00> : vector<16x1xf32>
    %77 = tpu.matmul %22, %76, %cst_38 {dimension_numbers = #tpu.dot_dimension_numbers<[1], [0], [0], [1], [0, 0, 1, 1], [], []>} : vector<16x24xf32>, vector<24x1xf32>, vector<16x1xf32> -> vector<16x1xf32>
    %78 = arith.addf %77, %23 : vector<16x1xf32>
    %cst_39 = arith.constant 3.000000e-01 : f32
    %79 = vector.broadcast %cst_39 : f32 to vector<16x1xf32>
    %80 = arith.mulf %79, %78 : vector<16x1xf32>
    %81 = arith.maximumf %78, %80 : vector<16x1xf32>
    %c3_i32_40 = arith.constant 3 : i32
    %82 = arith.muli %c3_i32_40, %0 : i32
    %c1_i32_41 = arith.constant 1 : i32
    %83 = arith.subi %82, %c1_i32_41 : i32
    %c600_i32_42 = arith.constant 600 : i32
    %84 = arith.cmpi sge, %83, %c600_i32_42 : i32
    %85 = arith.ori %1, %84 : i1
    %cst_43 = arith.constant 0.000000e+00 : f32
    %86 = vector.broadcast %cst_43 : f32 to vector<16x1xf32>
    %87 = arith.select %85, %86, %81 : vector<16x1xf32>
    %88 = vector.extract_strided_slice %9 {offsets = [0, 127], sizes = [8, 1], strides = [1, 1]} : vector<8x128xf32> to vector<8x1xf32>
    %89 = tpu.concatenate %88, %19, %21 in 0 : vector<8x1xf32>, vector<8x1xf32>, vector<8x1xf32> -> vector<24x1xf32>
    %cst_44 = arith.constant dense<0.000000e+00> : vector<16x1xf32>
    %90 = tpu.matmul %22, %89, %cst_44 {dimension_numbers = #tpu.dot_dimension_numbers<[1], [0], [0], [1], [0, 0, 1, 1], [], []>} : vector<16x24xf32>, vector<24x1xf32>, vector<16x1xf32> -> vector<16x1xf32>
    %91 = arith.addf %90, %23 : vector<16x1xf32>
    %cst_45 = arith.constant 3.000000e-01 : f32
    %92 = vector.broadcast %cst_45 : f32 to vector<16x1xf32>
    %93 = arith.mulf %92, %91 : vector<16x1xf32>
    %94 = arith.maximumf %91, %93 : vector<16x1xf32>
    %c128_i32_46 = arith.constant 128 : i32
    %95 = arith.addi %0, %c128_i32_46 : i32
    %c3_i32_47 = arith.constant 3 : i32
    %96 = arith.muli %c3_i32_47, %95 : i32
    %c600_i32_48 = arith.constant 600 : i32
    %97 = arith.cmpi sge, %96, %c600_i32_48 : i32
    %cst_49 = arith.constant 0.000000e+00 : f32
    %98 = vector.broadcast %cst_49 : f32 to vector<16x1xf32>
    %99 = arith.select %97, %98, %94 : vector<16x1xf32>
    %100 = vector.extract_strided_slice %74 {offsets = [0, 0], sizes = [16, 127], strides = [1, 1]} : vector<16x128xf32> to vector<16x127xf32>
    %101 = tpu.concatenate %87, %100 in 1 : vector<16x1xf32>, vector<16x127xf32> -> vector<16x128xf32>
    %102 = vector.extract_strided_slice %56 {offsets = [0, 1], sizes = [16, 127], strides = [1, 1]} : vector<16x128xf32> to vector<16x127xf32>
    %103 = tpu.concatenate %102, %99 in 1 : vector<16x127xf32>, vector<16x1xf32> -> vector<16x128xf32>
    %104 = tpu.concatenate %101, %56, %65 in 0 : vector<16x128xf32>, vector<16x128xf32>, vector<16x128xf32> -> vector<48x128xf32>
    %105 = tpu.concatenate %56, %65, %74 in 0 : vector<16x128xf32>, vector<16x128xf32>, vector<16x128xf32> -> vector<48x128xf32>
    %106 = tpu.concatenate %65, %74, %103 in 0 : vector<16x128xf32>, vector<16x128xf32>, vector<16x128xf32> -> vector<48x128xf32>
    %cst_50 = arith.constant dense<0.000000e+00> : vector<16x128xf32>
    %107 = tpu.matmul %24, %104, %cst_50 {dimension_numbers = #tpu.dot_dimension_numbers<[1], [0], [0], [1], [0, 0, 1, 1], [], []>} : vector<16x48xf32>, vector<48x128xf32>, vector<16x128xf32> -> vector<16x128xf32>
    %108 = vector.broadcast %25 : vector<16x1xf32> to vector<16x128xf32>
    %109 = arith.addf %107, %108 : vector<16x128xf32>
    %cst_51 = arith.constant dense<0.000000e+00> : vector<16x128xf32>
    %110 = tpu.matmul %24, %105, %cst_51 {dimension_numbers = #tpu.dot_dimension_numbers<[1], [0], [0], [1], [0, 0, 1, 1], [], []>} : vector<16x48xf32>, vector<48x128xf32>, vector<16x128xf32> -> vector<16x128xf32>
    %111 = vector.broadcast %25 : vector<16x1xf32> to vector<16x128xf32>
    %112 = arith.addf %110, %111 : vector<16x128xf32>
    %cst_52 = arith.constant dense<0.000000e+00> : vector<16x128xf32>
    %113 = tpu.matmul %24, %106, %cst_52 {dimension_numbers = #tpu.dot_dimension_numbers<[1], [0], [0], [1], [0, 0, 1, 1], [], []>} : vector<16x48xf32>, vector<48x128xf32>, vector<16x128xf32> -> vector<16x128xf32>
    %114 = vector.broadcast %25 : vector<16x1xf32> to vector<16x128xf32>
    %115 = arith.addf %113, %114 : vector<16x128xf32>
    %c0_53 = arith.constant 0 : index
    %c0_54 = arith.constant 0 : index
    %116 = vector.load %arg9[%c0_53, %c0_54] : memref<16x8xf32, #tpu.memory_space<vmem>>, vector<16x8xf32>
    %c0_55 = arith.constant 0 : index
    %c0_56 = arith.constant 0 : index
    %117 = vector.load %arg10[%c0_55, %c0_56] : memref<16x1xf32, #tpu.memory_space<vmem>>, vector<16x1xf32>
    %118 = vector.extract_strided_slice %3 {offsets = [0, 0, 0], sizes = [1, 8, 128], strides = [1, 1, 1]} : vector<3x8x128xf32> to vector<1x8x128xf32>
    %119 = vector.shape_cast %118 : vector<1x8x128xf32> to vector<8x128xf32>
    %cst_57 = arith.constant dense<0.000000e+00> : vector<16x128xf32>
    %120 = tpu.matmul %116, %119, %cst_57 {dimension_numbers = #tpu.dot_dimension_numbers<[1], [0], [0], [1], [0, 0, 1, 1], [], []>} : vector<16x8xf32>, vector<8x128xf32>, vector<16x128xf32> -> vector<16x128xf32>
    %121 = arith.addf %109, %120 : vector<16x128xf32>
    %122 = vector.broadcast %117 : vector<16x1xf32> to vector<16x128xf32>
    %123 = arith.addf %121, %122 : vector<16x128xf32>
    %124 = vector.extract_strided_slice %3 {offsets = [1, 0, 0], sizes = [1, 8, 128], strides = [1, 1, 1]} : vector<3x8x128xf32> to vector<1x8x128xf32>
    %125 = vector.shape_cast %124 : vector<1x8x128xf32> to vector<8x128xf32>
    %cst_58 = arith.constant dense<0.000000e+00> : vector<16x128xf32>
    %126 = tpu.matmul %116, %125, %cst_58 {dimension_numbers = #tpu.dot_dimension_numbers<[1], [0], [0], [1], [0, 0, 1, 1], [], []>} : vector<16x8xf32>, vector<8x128xf32>, vector<16x128xf32> -> vector<16x128xf32>
    %127 = arith.addf %112, %126 : vector<16x128xf32>
    %128 = vector.broadcast %117 : vector<16x1xf32> to vector<16x128xf32>
    %129 = arith.addf %127, %128 : vector<16x128xf32>
    %130 = vector.extract_strided_slice %3 {offsets = [2, 0, 0], sizes = [1, 8, 128], strides = [1, 1, 1]} : vector<3x8x128xf32> to vector<1x8x128xf32>
    %131 = vector.shape_cast %130 : vector<1x8x128xf32> to vector<8x128xf32>
    %cst_59 = arith.constant dense<0.000000e+00> : vector<16x128xf32>
    %132 = tpu.matmul %116, %131, %cst_59 {dimension_numbers = #tpu.dot_dimension_numbers<[1], [0], [0], [1], [0, 0, 1, 1], [], []>} : vector<16x8xf32>, vector<8x128xf32>, vector<16x128xf32> -> vector<16x128xf32>
    %133 = arith.addf %115, %132 : vector<16x128xf32>
    %134 = vector.broadcast %117 : vector<16x1xf32> to vector<16x128xf32>
    %135 = arith.addf %133, %134 : vector<16x128xf32>
    %136 = arith.maximumf %123, %129 : vector<16x128xf32>
    %137 = arith.maximumf %136, %135 : vector<16x128xf32>
    %c0_60 = arith.constant 0 : index
    %c0_61 = arith.constant 0 : index
    %c0_62 = arith.constant 0 : index
    %138 = vector.load %arg11[%c0_60, %c0_61, %c0_62] : memref<1x16x128xf32, #tpu.memory_space<vmem>>, vector<1x16x128xf32>
    %139 = vector.shape_cast %138 : vector<1x16x128xf32> to vector<16x128xf32>
    %140 = vector.shape_cast %137 : vector<16x128xf32> to vector<1x16x128xf32>
    tpu.vector_store %arg11[%c0_60, %c0_61, %c0_62], %140 {strides = array<i32>} : memref<1x16x128xf32, #tpu.memory_space<vmem>>, vector<1x16x128xf32>,
    return
  }
  func.func @transform_0(%arg0: i32, %arg1: i32) -> (i32, i32, i32, i32) {
    %c0_i32 = arith.constant 0 : i32
    %c0_i32_0 = arith.constant 0 : i32
    %c0_i32_1 = arith.constant 0 : i32
    return %arg0, %c0_i32, %c0_i32_0, %arg1 : i32, i32, i32, i32
  }
  func.func @transform_1(%arg0: i32, %arg1: i32) -> (i32, i32, i32, i32) {
    %c1_i32 = arith.constant 1 : i32
    %0 = arith.muli %arg1, %c1_i32 : i32
    %c1_i32_0 = arith.constant 1 : i32
    %1 = arith.subi %0, %c1_i32_0 : i32
    %c0_i32 = arith.constant 0 : i32
    %2 = arith.maxsi %1, %c0_i32 : i32
    %c0_i32_1 = arith.constant 0 : i32
    %c0_i32_2 = arith.constant 0 : i32
    %c0_i32_3 = arith.constant 0 : i32
    return %arg0, %c0_i32_1, %c0_i32_2, %2 : i32, i32, i32, i32
  }
  func.func @transform_2(%arg0: i32, %arg1: i32) -> (i32, i32, i32, i32) {
    %c1_i32 = arith.constant 1 : i32
    %0 = arith.muli %arg1, %c1_i32 : i32
    %c1_i32_0 = arith.constant 1 : i32
    %1 = arith.addi %0, %c1_i32_0 : i32
    %c0_i32 = arith.constant 0 : i32
    %c0_i32_1 = arith.constant 0 : i32
    %c0_i32_2 = arith.constant 0 : i32
    return %arg0, %c0_i32, %c0_i32_1, %1 : i32, i32, i32, i32
  }
  func.func @transform_3(%arg0: i32, %arg1: i32) -> (i32, i32) {
    %c0_i32 = arith.constant 0 : i32
    %c0_i32_0 = arith.constant 0 : i32
    %c0_i32_1 = arith.constant 0 : i32
    return %c0_i32, %c0_i32_0 : i32, i32
  }
  func.func @transform_4(%arg0: i32, %arg1: i32) -> (i32, i32) {
    %c0_i32 = arith.constant 0 : i32
    %c0_i32_0 = arith.constant 0 : i32
    %c0_i32_1 = arith.constant 0 : i32
    return %c0_i32, %c0_i32_0 : i32, i32
  }
  func.func @transform_5(%arg0: i32, %arg1: i32) -> (i32, i32) {
    %c0_i32 = arith.constant 0 : i32
    %c0_i32_0 = arith.constant 0 : i32
    %c0_i32_1 = arith.constant 0 : i32
    return %c0_i32, %c0_i32_0 : i32, i32
  }
  func.func @transform_6(%arg0: i32, %arg1: i32) -> (i32, i32) {
    %c0_i32 = arith.constant 0 : i32
    %c0_i32_0 = arith.constant 0 : i32
    %c0_i32_1 = arith.constant 0 : i32
    return %c0_i32, %c0_i32_0 : i32, i32
  }
  func.func @transform_7(%arg0: i32, %arg1: i32) -> (i32, i32) {
    %c0_i32 = arith.constant 0 : i32
    %c0_i32_0 = arith.constant 0 : i32
    %c0_i32_1 = arith.constant 0 : i32
    return %c0_i32, %c0_i32_0 : i32, i32
  }
  func.func @transform_8(%arg0: i32, %arg1: i32) -> (i32, i32) {
    %c0_i32 = arith.constant 0 : i32
    %c0_i32_0 = arith.constant 0 : i32
    %c0_i32_1 = arith.constant 0 : i32
    return %c0_i32, %c0_i32_0 : i32, i32
  }
  func.func @transform_9(%arg0: i32, %arg1: i32) -> (i32, i32, i32) {
    %c0_i32 = arith.constant 0 : i32
    %c0_i32_0 = arith.constant 0 : i32
    return %arg0, %c0_i32, %arg1 : i32, i32, i32
  }
}

</mosaic_0001>

<bundles_post_ra>
// kernel: tpu_custom_call.1
= control target key start
LH: loop header
LB: loop body
LE: loop exit
PB: predicated region body
PF: predicated region fallthrough
CT: control target
= control target key end

     0   :  { %s3084_s0 = inlined_call_operand.hbm [shape: f32[2,3,8,384], index: 0, kind: input, shape index: {}]   ;;  %s3085_s1 = inlined_call_operand.hbm [shape: f32[2,3,8,384], index: 1, kind: input, shape index: {}]   ;;  %s3086_s2 = inlined_call_operand.hbm [shape: f32[2,3,8,384], index: 2, kind: input, shape index: {}]   ;;  %s3087_s3 = inlined_call_operand.vmem [shape: f32[16,24], index: 3, kind: input, shape index: {}]   ;;  %s3088_s4 = inlined_call_operand.vmem [shape: f32[16,1], index: 4, kind: input, shape index: {}]   ;;  %s3089_s5 = inlined_call_operand.vmem [shape: f32[16,48], index: 5, kind: input, shape index: {}]   ;;  %s3090_s6 = inlined_call_operand.vmem [shape: f32[16,1], index: 6, kind: input, shape index: {}]   ;;  %s3091_s7 = inlined_call_operand.vmem [shape: f32[16,8], index: 7, kind: input, shape index: {}]   ;;  %s3092_s8 = inlined_call_operand.vmem [shape: f32[16,1], index: 8, kind: input, shape index: {}]   ;;  %s3093_s9 = inlined_call_operand.hbm [shape: f32[2,16,200], index: 9, kind: output, shape index: {}]  }
   0x1   :  { %3124 = sst [smem:[#allocation25_spill]] %s3084_s0 }
   0x2   :  { %3125 = sst [smem:[#allocation26_spill]] %s3085_s1 }
   0x3   :  { %3126 = sst [smem:[#allocation27_spill]] %s3087_s3 }
   0x4   :  { %3127 = sst [smem:[#allocation28_spill]] %s3088_s4 }
   0x5   :  { %3128 = sst [smem:[#allocation29_spill]] %s3089_s5 }
   0x6   :  { %3129 = sst [smem:[#allocation30_spill]] %s3090_s6 }
   0x7   :  { %3130 = sst [smem:[#allocation31_spill]] %s3091_s7 }
   0x8   :  { %3131 = sst [smem:[#allocation32_spill]] %s3092_s8 }
   0x9   :  { %3132 = sst [smem:[#allocation33_spill]] %s3093_s9 }
   0xa   :  { %14 = vsyncpa [#allocation3], 0 }
   0xb   :  { %16 = vsyncpa [#allocation3 + $0x1], 0 }
   0xc   :  { %17 = vsyncpa [#allocation6], 0 }
   0xd   :  { %19 = vsyncpa [#allocation6 + $0x1], 0 }
   0xe   :  { %20 = vsyncpa [#allocation4], 0 }
   0xf   :  { %22 = vsyncpa [#allocation4 + $0x1], 0  ;;  %s2453_s30 = smov 0   ;;  %s2455_s10 = smov 0  }
  0x10   :  { %s2457_s11 = smov 0   ;;  %s2459_s12 = smov 0  }
  0x11   :  { %s2461_s13 = smov 0   ;;  %s2463_s14 = smov 0  }
  0x12   :  { %s2465_s15 = smov 0   ;;  %s2467_s16 = smov 0  }
  0x13   :  { %s2469_s17 = smov 0   ;;  %s2471_s18 = smov 0  }
  0x14   :  { %s2473_s19 = smov 0   ;;  %s2475_s20 = smov 0  }
  0x15   :  { %s2477_s21 = smov 0   ;;  %s2479_s22 = smov 0  }
  0x16 LB: > { %3133 = sst [smem:[#allocation13_spill]] %s2356_s14  ;;  %s37_s23 = sadd.s32 1, %s2380_s20  ;;  %s2388_s22 = sphi %s2479_s22, %s28_s22   ;;  %s2384_s21 = sphi %s2477_s21, %s3212_s21   ;;  %s2380_s20 = sphi %s2475_s20, %s3203_s20   ;;  %s2376_s19 = sphi %s2473_s19, %s3202_s19   ;;  %s2372_s18 = sphi %s2471_s18, %s3201_s18   ;;  %s2368_s17 = sphi %s2469_s17, %s3200_s17   ;;  %s2364_s16 = sphi %s2467_s16, %s3211_s16   ;;  %s2360_s15 = sphi %s2465_s15, %s3210_s15   ;;  %s2356_s14 = sphi %s2463_s14, %s3198_s14   ;;  %s2352_s13 = sphi %s2461_s13, %s3209_s13   ;;  %s2348_s12 = sphi %s2459_s12, %s3208_s12   ;;  %s2344_s11 = sphi %s2457_s11, %s3207_s11   ;;  %s2340_s10 = sphi %s2455_s10, %s3206_s10   ;;  %s2336_s30 = sphi %s2453_s30, %s3205_s30  }
  0x17   : > { %3134 = sst [smem:[#allocation14_spill]] %s2360_s15  ;;  %p38_p0 = scmp.ge.s32.totalorder %s37_s23, 2 }
  0x18   : > { %3135 = sst [smem:[#allocation15_spill]] %s2368_s17  ;;  %s40_s24 = sadd.s32 1, %s2384_s21 }
  0x19   : > { %3136 = sst [smem:[#allocation16_spill]] %s2372_s18  ;;  %s2524_s25 = sadd.s32 4294967295, %s2388_s22  }
  0x1a   : > { %3137 = sst [smem:[#allocation17_spill]] %s2376_s19  ;;  %p3106_p1 = scmp.eq.s32.totalorder %s2388_s22, 0 }
  0x1b   : > { %3138 = sst [smem:[#allocation18_spill]] %s2380_s20  ;;  %s3214_s24 = smov (!%p38_p0, %s40_s24), %s2384_s21 }
  0x1c   : > { %3139 = sst [smem:[#allocation19_spill]] %s2384_s21  ;;  %p3105_p2 = scmp.eq.s32.totalorder %s2524_s25, 0 }
  0x1d   : > { %s2527_s26 = scalar_select %p38_p0, 0, %s37_s23  }
  0x1e   : > { %p42_p3 = scmp.ge.s32.totalorder %s3214_s24, 2  ;;  %s83_s9 = sadd.s32 1, %s2356_s14 }
  0x1f   : > { %3140 = sst [smem:[#allocation20_spill]] %s2527_s26  ;;  %s45_s27 = ssub.s32 %s2380_s20, %s2527_s26 }
  0x20   : > { %s3216_s24 = smov (%p42_p3, %s3214_s24), 0  ;;  %p90_p4 = scmp.ne.s32.totalorder %s2356_s14, %s2352_s13 }
  0x21   : > { %3141 = sst [smem:[#allocation21_spill]] %s3216_s24  ;;  %s2537_s28 = ssub.s32 %s2384_s21, %s3216_s24 }
  0x22   : > { %s2540_s29 = sor.u32 %s45_s27, %s2537_s28  ;;  %p96_p5 = scmp.ne.s32.totalorder %s2352_s13, %s2348_s12 }
  0x23   : > { %s107_s24 = sadd.s32 1, %s2527_s26  ;;  %p81_p8 = scmp.eq.s32.totalorder %s2537_s28, 0 }
  0x24   : > { %p2549_p7 = por %p96_p5, %p3105_p2  ;;  %s2554_s7 = ssub.s32 %s37_s23, %s107_s24 }
  0x25   : > { %p92_p9 = por %p90_p4, %p3106_p1  ;;  %p3104_p10 = scmp.lt.s32.totalorder %s2388_s22, 4 }
  0x26   : > { %s3142_s19 = scalar_select %p2549_p7, 1, 0 }
  0x27   : > { %s2562_s8 = scalar_select %p81_p8, %s2356_s14, %s83_s9  }
  0x28   : > { %s344_s12 = sand.u32 1, %s2388_s22   ;;  %s346_s5 = sand.u32 1, %s2356_s14  }
  0x29   : > { %3143 = sst [smem:[#allocation22_spill]] %s2562_s8  ;;  %s1963_s4 = smul.u32 24, %s346_s5 }
  0x2a   : > { %s2333_s3 = smul.u32 1152, %s2384_s21  ;;  %p2571_p11 = pnand %p3104_p10, %p92_p9 }
  0x2b   : > { %s3145_s1 = sld [smem:[#allocation26_spill]]  ;;  %s348_s9 = scalar_lea.vmem [#allocation5], %s1963_s4 }
  0x2c   : > { %s359_s27 = sshll.u32 %s348_s9, 4  ;;  %s2583_s5 = scalar_lea.sflag [#allocation6], %s344_s12  ;;  %s2580_s27 = int_to_ptr.vmem [resolvable:$true] %s359_s27 }
  0x2d   : > { %p2144_p0 = pneg %p2571_p11 }
  0x31   : > { %s2578_s26 = scalar_lea.hbm %s3145_s1, %s2333_s3  ;;  %s2147_s24 = scalar_lea.hbm %s3145_s1, 2304 }
  0x32   : > { %s2142_s6 = scalar_lea.hbm %s2578_s26, 384  ;;  %p2148_p5 = scmp.lt.u32.totalorder %s2578_s26, %s3145_s1 }
  0x33   : > { %p2143_p13 = scmp.ne.s32.totalorder %s2578_s26, %s2142_s6  ;;  %p2149_p8 = scmp.lt.u32.totalorder %s2147_s24, %s2142_s6 }
  0x34   : > { %p2151_p10 = scmp.lt.u32.totalorder %s2142_s6, %s2578_s26 }
  0x35   : > { %p2145_p3 = pnand %p2144_p0, %p2143_p13  ;;  %p2150_p9 = por %p2149_p8, %p2148_p5 }
  0x37   : > { %p2146_p4 = pneg %p2145_p3  ;;  %p2152_p2 = por %p2151_p10, %p2150_p9 }
  0x39   : > { %p2153_p1 = pnand %p2152_p2, %p2146_p4 }
  0x3b   : > { %2156 = shalt.err (!%p2153_p1)
}
  0x3c   : > { %s2157_s12 = scalar_lea.vmem %s2580_s27, 384  ;;  %s2390_s9 = smov [#allocation5]  }
  0x3d   : > { %p2158_p13 = scmp.ne.s32.totalorder %s2580_s27, %s2157_s12  ;;  %s2162_s3 = sshll.u32 %s2390_s9, 4  ;;  %s2163_s3 = int_to_ptr.vmem [resolvable:$false] %s2162_s3 }
  0x3e   : > { %s2164_s8 = scalar_lea.vmem %s2163_s3, 768  ;;  %p2165_p12 = scmp.lt.s32.totalorder %s2580_s27, %s2163_s3 }
  0x3f   : > { %p2160_p3 = pnand %p2158_p13, %p2144_p0  ;;  %p2166_p5 = scmp.lt.s32.totalorder %s2164_s8, %s2157_s12 }
  0x41   : > { %p2161_p6 = pneg %p2160_p3  ;;  %p2167_p8 = por %p2166_p5, %p2165_p12 }
  0x43   : > { %p2168_p10 = pnand %p2167_p8, %p2161_p6 }
  0x45   : > { %2171 = shalt.err (!%p2168_p10)
}
  0x46   : > { %s3107_s6 = smov 384   ;;  %s3109_s23 = smov 128  }
  0x47   : > { %s3111_s24 = smov 8   ;;  %p390_p1 = scmp.lt.s32.totalorder %s2388_s22, 5 }
  0x48   : > { %1983 = dma.hbm_to_vmem [thread:$0]  (!%p2571_p11), %s2578_s26, 384, %s2580_s27, %s2583_s5, %s3107_s6, %s3109_s23, %s3111_s24  }
  0x49   : > { %p3146_p2 = scmp.ge.s32.totalorder %s2388_s22, 1  ;;  %s1659_s12 = sadd.s32 4294967294, %s2388_s22  }
  0x4a   : > { %s49_s9 = sadd.s32 1, %s2368_s17  ;;  %p3148_p12 = scmp.eq.s32.totalorder %s2540_s29, 0 }
  0x4b   : > { %p2617_p6 = pnand %p3146_p2, %p390_p1  ;;  %p56_p0 = scmp.ne.s32.totalorder %s2368_s17, %s2364_s16 }
  0x4c   : > { %s2626_s3 = scalar_select %p3148_p12, %s2368_s17, %s49_s9  }
  0x4d   : > { %p62_p4 = scmp.ne.s32.totalorder %s2364_s16, %s2360_s15  ;;  %p278_p9 = scmp.eq.s32.totalorder %s2524_s25, 3 }
  0x4e   : > { %3149 = sst [smem:[#allocation23_spill]] %s2626_s3  ;;  %p284_p13 = scmp.eq.s32.totalorder %s1659_s12, 3 }
  0x4f   : > { %p3150_p3 = scmp.eq.s32.totalorder %s2388_s22, 0  ;;  %p3151_p8 = scmp.eq.s32.totalorder %s2524_s25, 0 }
  0x50   : > { %p2641_p10 = por %p278_p9, %p56_p0  ;;  %p2645_p1 = por %p284_p13, %p62_p4 }
  0x51   : > { %p58_p5 = por %p3150_p3, %p56_p0  ;;  %p2637_p11 = por %p3151_p8, %p62_p4 }
  0x52   : > { %s3153_s26 = scalar_select %p2641_p10, 1, 0 }
  0x53   : > { %s3152_s18 = scalar_select %p2637_p11, 1, 0 }
  0x54   : > { %s3154_s27 = scalar_select %p2645_p1, 1, 0 }
  0x55   : > { %s322_s29 = sand.u32 1, %s2368_s17   ;;  %s3156_s8 = smul.u32 9, %s2384_s21 }
  0x56   : > { %3155 = sst [smem:[#allocation24_spill]] %s3154_s27  ;;  %s1961_s12 = smul.u32 24, %s322_s29 }
  0x57   : > { %s2653_s9 = sadd.s32 %s2380_s20, %s3156_s8  ;;  %p3157_p2 = scmp.lt.s32.totalorder %s2388_s22, 4 }
  0x58   : > { %s3116_s6 = sshll.u32 %s2653_s9, 7  ;;  %s3159_s0 = sld [smem:[#allocation25_spill]] }
  0x59   : > { %p2658_p12 = pnand %p3157_p2, %p58_p5  ;;  %s326_s8 = scalar_lea.vmem [#allocation2], %s1961_s12 }
  0x5a   : > { %s334_s21 = sshll.u32 %s326_s8, 4  ;;  %s2671_s20 = scalar_lea.sflag [#allocation3], %s322_s29  ;;  %s2669_s21 = int_to_ptr.vmem [resolvable:$true] %s334_s21 }
  0x5b   : > { %p2174_p4 = pneg %p2658_p12 }
  0x5e   : > { %s2667_s3 = scalar_lea.hbm %s3159_s0, %s3116_s6  ;;  %s2177_s6 = scalar_lea.hbm %s3159_s0, 2304 }
  0x5f   : > { %s2172_s17 = scalar_lea.hbm %s2667_s3, 384  ;;  %p2178_p3 = scmp.lt.u32.totalorder %s2667_s3, %s3159_s0 }
  0x60   : > { %p2173_p0 = scmp.ne.s32.totalorder %s2667_s3, %s2172_s17  ;;  %p2179_p5 = scmp.lt.u32.totalorder %s2177_s6, %s2172_s17 }
  0x61   : > { %p2181_p2 = scmp.lt.u32.totalorder %s2172_s17, %s2667_s3 }
  0x62   : > { %p2175_p9 = pnand %p2174_p4, %p2173_p0  ;;  %p2180_p8 = por %p2179_p5, %p2178_p3 }
  0x64   : > { %p2176_p13 = pneg %p2175_p9  ;;  %p2182_p1 = por %p2181_p2, %p2180_p8 }
  0x66   : > { %p2183_p10 = pnand %p2182_p1, %p2176_p13 }
  0x68   : > { %2186 = shalt.err (!%p2183_p10)
}
  0x69   : > { %s2187_s29 = scalar_lea.vmem %s2669_s21, 384  ;;  %s2394_s12 = smov [#allocation2]  }
  0x6a   : > { %p2188_p0 = scmp.ne.s32.totalorder %s2669_s21, %s2187_s29  ;;  %s2192_s8 = sshll.u32 %s2394_s12, 4  ;;  %s2193_s8 = int_to_ptr.vmem [resolvable:$false] %s2192_s8 }
  0x6b   : > { %s2194_s14 = scalar_lea.vmem %s2193_s8, 768  ;;  %p2195_p11 = scmp.lt.s32.totalorder %s2669_s21, %s2193_s8 }
  0x6c   : > { %p2190_p9 = pnand %p2188_p0, %p2174_p4  ;;  %p2196_p3 = scmp.lt.s32.totalorder %s2194_s14, %s2187_s29 }
  0x6e   : > { %p2191_p7 = pneg %p2190_p9  ;;  %p2197_p5 = por %p2196_p3, %p2195_p11 }
  0x70   : > { %p2198_p8 = pnand %p2197_p5, %p2191_p7 }
  0x72   : > { %2201 = shalt.err (!%p2198_p8)
}
  0x73   : > { %s3160_s17 = smov 8   ;;  %s3161_s6 = smov 128  }
  0x74   : > { %s3162_s27 = smov 384   ;;  %s3163_s23 = sor.u32 %s2554_s7, %s2537_s28 }
  0x75   : > { %1980 = dma.hbm_to_vmem [thread:$0]  (!%p2658_p12), %s2667_s3, 384, %s2669_s21, %s2671_s20, %s3162_s27, %s3161_s6, %s3160_s17  }
  0x76   : > { %p111_p7 = scmp.eq.s32.totalorder %s3163_s23, 0  ;;  %s113_s1 = sadd.s32 1, %s2344_s11 }
  0x77   : > { %p120_p11 = scmp.ne.s32.totalorder %s2344_s11, %s2340_s10  ;;  %p126_p10 = scmp.ne.s32.totalorder %s2340_s10, %s2336_s30 }
  0x78   : > { %s2707_s24 = scalar_select %p111_p7, %s2344_s11, %s113_s1  }
  0x79   : > { %s3164_s29 = sshll.u32 %s2653_s9, 7  ;;  %s371_s0 = sand.u32 1, %s2344_s11  }
  0x7a   : > { %s1572_s14 = scalar_lea.hbm %s3086_s2, %s3164_s29  ;;  %p3165_p1 = scmp.eq.s32.totalorder %s2388_s22, 0 }
  0x7b   : > { %p3166_p13 = scmp.eq.s32.totalorder %s2524_s25, 0  ;;  %s1965_s7 = smul.u32 24, %s371_s0 }
  0x7c   : > { %p122_p4 = por %p120_p11, %p3165_p1  ;;  %p3168_p12 = scmp.lt.s32.totalorder %s2388_s22, 4 }
  0x7d   : > { %p2723_p2 = por %p126_p10, %p3166_p13  ;;  %s2733_s30 = scalar_lea.hbm %s1572_s14, 128 }
  0x7e   : > { %p2729_p0 = pnand %p3168_p12, %p122_p4  ;;  %s373_s21 = scalar_lea.vmem [#allocation7], %s1965_s7 }
  0x7f   : > { %s3167_s15 = scalar_select %p2723_p2, 1, 0 }
  0x80   : > { %s382_s28 = sshll.u32 %s373_s21, 4  ;;  %s2232_s3 = scalar_lea.hbm %s1572_s14, 512  ;;  %s2735_s28 = int_to_ptr.vmem [resolvable:$true] %s382_s28 }
  0x81   : > { %p2203_p9 = scmp.ne.s32.totalorder %s2733_s30, %s2232_s3  ;;  %p2204_p3 = pneg %p2729_p0 }
  0x82   : > { %s2207_s23 = scalar_lea.hbm %s3086_s2, 2304  ;;  %p2208_p7 = scmp.lt.u32.totalorder %s2733_s30, %s3086_s2 }
  0x83   : > { %p2205_p5 = pnand %p2204_p3, %p2203_p9  ;;  %p2209_p11 = scmp.lt.u32.totalorder %s2207_s23, %s2232_s3 }
  0x84   : > { %p2211_p1 = scmp.lt.u32.totalorder %s2232_s3, %s2733_s30 }
  0x85   : > { %p2206_p8 = pneg %p2205_p5  ;;  %p2210_p10 = por %p2209_p11, %p2208_p7 }
  0x87   : > { %p2212_p4 = por %p2211_p1, %p2210_p10 }
  0x89   : > { %p2213_p13 = pnand %p2212_p4, %p2206_p8 }
  0x8b   : > { %2216 = shalt.err (!%p2213_p13)
}
  0x8c   : > { %s2217_s12 = scalar_lea.vmem %s2735_s28, 384  ;;  %s2395_s8 = smov [#allocation7]  }
  0x8d   : > { %p2218_p12 = scmp.ne.s32.totalorder %s2735_s28, %s2217_s12  ;;  %s2222_s14 = sshll.u32 %s2395_s8, 4  ;;  %s2223_s14 = int_to_ptr.vmem [resolvable:$false] %s2222_s14 }
  0x8e   : > { %s2224_s7 = scalar_lea.vmem %s2223_s14, 768  ;;  %p2225_p2 = scmp.lt.s32.totalorder %s2735_s28, %s2223_s14 }
  0x8f   : > { %p2220_p9 = pnand %p2218_p12, %p2204_p3  ;;  %p2226_p7 = scmp.lt.s32.totalorder %s2224_s7, %s2217_s12 }
  0x91   : > { %p2221_p5 = pneg %p2220_p9  ;;  %p2227_p11 = por %p2226_p7, %p2225_p2 }
  0x93   : > { %p2228_p10 = pnand %p2227_p11, %p2221_p5 }
  0x95   : > { %2231 = shalt.err (!%p2228_p10)
}
  0x96   : > { %1986 = dma.hbm_to_vmem [thread:$0]  (!%p2729_p0), %s2733_s30, 384, %s2735_s28, %s2583_s5, %s3162_s27, %s3161_s6, %s3160_s17  }
  0x97   : > { %394 = sbr.rel (%p2617_p6) target bundleno = 997 (0x3e5), region = 56  ;;  %s2768_s21 = sand.u32 (!%p2617_p6), 1, %s2364_s16  }
  0x98   : > { %s1966_s3 = smul.u32 (!%p2617_p6), 24, %s2768_s21  ;;  %s397_s0 = scalar_lea.sflag (!%p2617_p6), [#allocation3], %s2768_s21 }
  0x99   : > { %p3170_p2 = scmp.ne.s32.totalorder (!%p2617_p6), %s3152_s18, 0 }
  0x9a   : > { %s2772_s9 = scalar_lea.vmem (!%p2617_p6), [#allocation2], %s1966_s3 }
  0x9e   : > { %2318 = dma.done.wait (%p3170_p2), %s397_s0, 384  }
  0x9f   : > { %2320 = vsyncadd (%p3170_p2), %s397_s0, 4294966912  ;;  %s405_s5 = sand.u32 1, %s2524_s25   ;;  %s407_s4 = sand.u32 1, %s2352_s13  }
  0xa0   : > { %s2780_s17 = smul.u32 24, %s407_s4  ;;  %s406_s6 = scalar_lea.sflag [#allocation6], %s405_s5 }
  0xa1   : > { %p3171_p6 = scmp.ne.s32.totalorder %s3142_s19, 0 }
  0xa2   : > { %s409_s27 = scalar_lea.vmem [#allocation5], %s2780_s17 }
  0xa3   : > { %2322 = dma.done.wait (%p3171_p6), %s406_s6, 384  }
  0xa4   : > { %2324 = vsyncadd (%p3171_p6), %s406_s6, 4294966912  ;;  %s416_s20 = sand.u32 1, %s2340_s10   ;;  %p3172_p0 = scmp.ne.s32.totalorder %s3167_s15, 0 }
  0xa5   : > { %s1968_s18 = smul.u32 24, %s416_s20 }
  0xa7   : > { %s418_s30 = scalar_lea.vmem [#allocation7], %s1968_s18 }
  0xa8   : > { %2326 = dma.done.wait (%p3172_p0), %s406_s6, 384  }
  0xa9   : > { %2328 = vsyncadd (%p3172_p0), %s406_s6, 4294966912  ;;  %s3173_s25 = sld [smem:[#allocation16_spill]]  ;;  %v481_v0 = vld [vmem:[%s418_s30] sm:$0xff]  ;;  %v2796_v1 = vld [vmem:[%s2772_s9 + $0x10] sm:$0xff]  ;;  %vm522_vm0 = vcmask 195584   ;;  %s2396_s19 = smov 127   ;;  %v755_v31 = vlaneseq }
  0xaa   : > { %507 = vrot.lane.b32.xlu0 %v481_v0, %s2396_s19  ;;  %v1673_v4 = vld [vmem:[%s418_s30 + $0x8] sm:$0xff]  ;;  %s3174_s1 = sld [smem:[#allocation27_spill]]  ;;  %s2397_s29 = smov 1   ;;  %v2810_v6 = vld [vmem:[%s2772_s9] sm:$0xff]  ;;  %v2398_v7 = vmov 0   ;;  %vm500_vm1 = vcmask 7168  }
  0xab   : > { %2120 = vset.pattern.permute.xlu1 %v2398_v7  ;;  %2119 = vset.pattern.permute.xlu0 %v2398_v7  ;;  %s3175_s14 = sld [smem:[#allocation28_spill]]  ;;  %v2827_v18 = vld [vmem:[%s2772_s9 + $0x8] sm:$0xff]  ;;  %vm510_vm2 = vcmask 1039360   ;;  %s3177_s6 = sld [smem:[#allocation29_spill]]  ;;  %vm1011_vm3 = vcmask 392192   ;;  %v756_v32 = vand.u32 127, %v755_v31 }
  0xac   : > { %v1883_v20 = vpack.c.bf16 %v2827_v18, %v2810_v6  ;;  %v1887_v22 = vpack.c.bf16 %v2796_v1, %v2827_v18  ;;  %s3180_s30 = sld [smem:[#allocation30_spill]]  ;;  %s3184_s12 = sld [smem:[#allocation32_spill]]  ;;  %vm1247_vm10 = vcmask 64512  }
  0xad   : > { %v757_v33 = vmul.u32 3, %v756_v32  ;;  %s3188_s4 = sld [smem:[#allocation31_spill]]  ;;  %s1669_s0 = sshll.u32 %s2768_s21, 4 }
  0xae   : > { %878 = vrot.lane.b32.xlu0 %v1673_v4, %s2396_s19  ;;  %s462_s9 = scalar_lea.vmem [#allocation8], %s1669_s0  ;;  %p3192_p12 = scmp.ne.s32.totalorder %s3153_s26, 0 }
  0xaf   : > { %p468_p3 = scmp.eq.s32.totalorder %s3173_s25, 0  ;;  %s1670_s17 = sshll.u32 %s3173_s25, 7 }
  0xb0   : > { %v484_v5 = vld [vmem:[%s3174_s1] sm:$0xff]  ;;  %v485_v21 = vld [vmem:[%s3174_s1 + $0x8] sm:$0xff]  ;;  %s965_s20 = sadd.s32 128, %s1670_s17  ;;  %s1522_s17 = sshll.u32 %s462_s9, 4  ;;  %s3001_s17 = int_to_ptr.vmem [resolvable:$true] %s1522_s17 }
  0xb1   : > { %s2137_s28 = scalar_select %p468_p3, 0, 255  ;;  %1780 = vmatprep.mubr.msk.f32.mxu0 %vm522_vm0, %v484_v5  ;;  %1807 = vmatprep.mubr.msk.f32.mxu1 %vm522_vm0, %v484_v5  ;;  %v2824_v16 = vld [vmem:[%s3175_s14 + $0x8] sm:$0xff]  ;;  %v2858_v29 = vld [vmem:[%s3177_s6] sm:$0xff] }
  0xb2   : > { %s3176_s7 = smov %s3175_s14  ;;  %v490_v62 = vld [vmem:[%s3180_s30] sm:$0xff]  ;;  %s3185_s8 = smov %s3184_s12 }
  0xb3   : > { %v2138_v2 = vld [vmem:[%s409_s27 + $0x10] sm:%s2137_s28]  ;;  %v2141_v9 = vld [vmem:[%s409_s27 + $0x8] sm:%s2137_s28]  ;;  %s754_s27 = smul.u32 384, %s3173_s25  ;;  %s3181_s28 = smov %s3180_s30 }
  0xb4   : > { %v2114_v3 = vpack.i.bf16 %v2796_v1, %v2138_v2  ;;  %v2834_v19 = vld [vmem:[%s3176_s7] sm:$0xff]  ;;  %s966_s18 = smul.u32 3, %s965_s20  ;;  %s2233_s14 = scalar_lea.vmem %s3001_s17, 256 }
  0xb5   : > { %v758_v34 = vstv %s754_s27  ;;  %s1682_s15 = sadd.s32 4294967295, %s754_s27  ;;  %p2234_p13 = scmp.ne.s32.totalorder %s3001_s17, %s2233_s14 }
  0xb6   : > { %2115 = vrot.lane.b32.xlu1 %v2114_v3, %s2397_s29  ;;  %v759_v38 = vadd.s32 %v758_v34, %v757_v33  ;;  %p967_p8 = scmp.ge.s32.totalorder %s966_s18, 600  ;;  %p870_p1 = scmp.ge.s32.totalorder %s1682_s15, 600 }
  0xb7   : > { %p2235_p9 = pnand %p2234_p13, %p3192_p12  ;;  %s2399_s3 = smov [#allocation8]  }
  0xb8   : > { %vm760_vm4 = vcmp.lt.s32.totalorder %v759_v38, 600  ;;  %v767_v47 = vadd.s32 1, %v759_v38  ;;  %v775_v61 = vadd.s32 2, %v759_v38  ;;  %s968_s30 = scalar_select %p967_p8, 1, 0 }
  0xb9   : > { %vm2869_vm5 = vmpackc.low %vm760_vm4, %vm760_vm4  ;;  %p871_p4 = por %p870_p1, %p468_p3  ;;  %p2236_p5 = pneg %p2235_p9 }
  0xba   : > { %503 = vrot.lane.b32.xlu1 %v2810_v6, %s2396_s19  ;;  %vm768_vm6 = vcmp.lt.s32.totalorder %v767_v47, 600  ;;  %vm776_vm8 = vcmp.lt.s32.totalorder %v775_v61, 600 }
  0xbb   : > { %vm2885_vm7 = vmpackc.low %vm768_vm6, %vm768_vm6  ;;  %s872_s27 = scalar_select %p871_p4, 1, 0 }
  0xbc   : > { %vm2900_vm9 = vmpackc.low %vm776_vm8, %vm776_vm8 }
 0x11c   : > { %v508_v8 = vpop.permute.xlu0 %507 }
 0x11d   : > { %880 = vrot.lane.b32.xlu0 %v508_v8, %s2397_s29 }
 0x120   : > { %v879_v13 = vpop.permute.xlu0 %878 }
 0x121   : > { %784 = vrot.lane.b32.xlu0 %v2141_v9, %s2397_s29  ;;  %882 = vrot.lane.b32.xlu1 %v879_v13, %s2397_s29 }
 0x125   : > { %519 = vperm.xlu0 %2119, %v2824_v16  }
 0x128   : > { %v2116_v10 = vpop.permute.xlu1 %2115 }
 0x129   : > { %v2118_v11 = vunpack.i.h.bf16 %v2116_v10  ;;  %v2117_v12 = vunpack.i.l.bf16 %v2116_v10 }
 0x12b   : > { %v501_v14 = vsel %vm500_vm1, %v2117_v12, %v2118_v11 }
 0x12c   : > { %v1879_v15 = vpack.c.bf16 %v2810_v6, %v501_v14  ;;  %v504_v17 = vpop.permute.xlu1 %503 }
 0x12d   : > { %786 = vrot.lane.b32.xlu1 %v504_v17, %s2397_s29  ;;  %v511_v23 = vsel %vm510_vm2, %v504_v17, %v508_v8  ;;  %v1245_v8 = vld [vmem:[%s3184_s12] sm:$0xff]  ;;  %v2916_v17 = vld [vmem:[%s3177_s6 + $0x8] sm:$0xff]  ;;  %s1508_s12 = scalar_lea.sflag [#allocation4], %s2768_s21 }
 0x12e   : > { %1880 = vmatprep.subr.bf16.mxu0 %v1879_v15 }
 0x12f   : > { %1882 = vmatpush3.bf16.msra.mxu0 %v1879_v15 }
 0x130   : > { %1778 = vmatprep.subr.mxu0 %v2827_v18 }
 0x131   : > { %514 = vperm.xlu1 %2120, %v2834_v19  }
 0x133   : > { %1779 = vmatpush3.msra.mxu0 %v2827_v18 }
 0x134   : > { %1781 = vmatmul.mubr.msk.f32.vlgmr.msra.gmra.mrb[0].mxu0 %vm522_vm0, %v485_v21  ;;  %1884 = vmatprep.subr.bf16.mxu0 %v1883_v20 }
 0x135   : > { %1886 = vmatpush3.bf16.msra.mxu0 %v1883_v20  ;;  %1789 = vmatprep.mubr.msk.f32.mxu0 %vm522_vm0, %v484_v5  ;;  %v2922_v20 = vld [vmem:[%s3188_s4] sm:$0xff] }
 0x136   : > { %1787 = vmatprep.subr.mxu0 %v2796_v1 }
 0x139   : > { %1788 = vmatpush3.msra.mxu0 %v2796_v1 }
 0x13a   : > { %1888 = vmatprep.subr.bf16.mxu0 %v1887_v22  ;;  %1790 = vmatmul.mubr.msk.f32.vlgmr.msra.gmra.mrb[2].mxu0 %vm522_vm0, %v485_v21 }
 0x13b   : > { %1890 = vmatpush3.bf16.msra.mxu0 %v1887_v22  ;;  %1798 = vmatprep.mubr.msk.f32.mxu0 %vm522_vm0, %v484_v5 }
 0x13c   : > { %1796 = vmatprep.subr.mxu0 %v511_v23 }
 0x13f   : > { %1797 = vmatpush3.msra.mxu0 %v511_v23  ;;  %v969_v23 = vstv %s968_s30  ;;  %s3190_s30 = sld [smem:[#allocation33_spill]] }
 0x140   : > { %1799 = vmatmul.mubr.msk.f32.vlgmr.msra.gmra.mrb[4].mxu0 %vm522_vm0, %v485_v21  ;;  %vm970_vm11 = vcmp.eq.s32.totalorder %v969_v23, 1 }
 0x141   : > { %1816 = vmatprep.mubr.msk.f32.mxu0 %vm522_vm0, %v484_v5 }
 0x145   : > { %s3191_s23 = smov %s3190_s30 }
 0x18f   : > { %v881_v24 = vpop.permute.xlu0 %880 }
 0x190   : > { %v1895_v25 = vpack.c.bf16 %v881_v24, %v2118_v11 }
 0x192   : > { %1896 = vmatprep.subr.bf16.mxu0 %v1895_v25 }
 0x193   : > { %v785_v26 = vpop.permute.xlu0 %784  ;;  %1898 = vmatpush3.bf16.msra.mxu0 %v1895_v25  ;;  %v883_v27 = vpop.permute.xlu1 %882 }
 0x194   : > { %v1891_v28 = vpack.c.bf16 %v2117_v12, %v785_v26  ;;  %1814 = vmatprep.subr.mxu0 %v883_v27 }
 0x196   : > { %1892 = vmatprep.subr.bf16.mxu1 %v1891_v28 }
 0x197   : > { %1894 = vmatpush3.bf16.msra.mxu1 %v1891_v28  ;;  %1815 = vmatpush3.msra.mxu0 %v883_v27 }
 0x198   : > { %1817 = vmatmul.mubr.msk.f32.vlgmr.msra.gmra.mrb[6].mxu0 %vm522_vm0, %v485_v21 }
 0x199   : > { %1846 = vmatprep.mubr.msk.f32.mxu0 %vm1011_vm3, %v2858_v29 }
 0x19f   : > { %v787_v30 = vpop.permute.xlu1 %786 }
 0x1a0   : > { %1805 = vmatprep.subr.mxu1 %v787_v30 }
 0x1a1   : > { %1806 = vmatpush3.msra.mxu1 %v787_v30 }
 0x1a2   : > { %1808 = vmatmul.mubr.msk.f32.vlgmr.msra.gmra.mrb[0].mxu1 %vm522_vm0, %v485_v21  ;;  %v2932_v21 = vld [vmem:[%s3188_s4 + $0x8] sm:$0xff] }
 0x1a3   : > { %1831 = vmatprep.mubr.msk.f32.mxu1 %vm1011_vm3, %v2858_v29 }
 0x1a4   : > { %v520_v35 = vpop.permute.xlu0 %519 }
 0x1b0   : > { %v515_v36 = vpop.permute.xlu1 %514 }
 0x207   : > { %v1782_v37 = vpop.f32.mrb[0].mxu0 }
 0x208   : > { %v601_v39 = vadd.f32 %v1782_v37, %v520_v35  ;;  %v595_v40 = vpop.f32.mrb[1].mxu0  ;;  %v1246_v37 = vld [vmem:[%s3185_s8 + $0x8] sm:$0xff] }
 0x209   : > { %v596_v41 = vadd.f32 %v595_v40, %v515_v36 }
 0x20a   : > { %v762_v42 = vmul.f32 0.3, %v601_v39 }
 0x20b   : > { %v761_v43 = vmul.f32 0.3, %v596_v41 }
 0x20c   : > { %v764_v44 = vmax.f32 %v601_v39, %v762_v42  ;;  %v873_v42 = vstv %s872_s27  ;;  %s2237_s27 = sshll.u32 %s2399_s3, 4  ;;  %s2238_s27 = int_to_ptr.vmem [resolvable:$false] %s2237_s27 }
 0x20d   : > { %v763_v45 = vmax.f32 %v596_v41, %v761_v43  ;;  %v1791_v46 = vpop.f32.mrb[2].mxu0  ;;  %vm874_vm12 = vcmp.eq.s32.totalorder %v873_v42, 1  ;;  %p2240_p7 = scmp.lt.s32.totalorder %s3001_s17, %s2238_s27 }
 0x20e   : > { %v676_v48 = vadd.f32 %v1791_v46, %v520_v35  ;;  %v670_v49 = vpop.f32.mrb[3].mxu0  ;;  %v766_v50 = vsel %vm760_vm4, %v764_v44, 0.0 }
 0x20f   : > { %v765_v52 = vsel %vm760_vm4, %v763_v45, 0.0  ;;  %v2873_v53 = vpack.c.bf16 %v764_v44, %v763_v45  ;;  %v671_v54 = vadd.f32 %v670_v49, %v515_v36 }
 0x210   : > { %v770_v55 = vmul.f32 0.3, %v676_v48  ;;  %v2126_v56 = vpack.i.bf16 %v766_v50, %v765_v52 }
 0x211   : > { %v769_v57 = vmul.f32 0.3, %v671_v54  ;;  %1917 = vmatprep.subr.msk.bf16.mxu0 %vm2869_vm5, %v2873_v53 }
 0x212   : > { %v772_v58 = vmax.f32 %v676_v48, %v770_v55  ;;  %2127 = vrot.lane.b32.xlu0 %v2126_v56, %s2396_s19  ;;  %1920 = vmatpush3.bf16.msk.msra.mxu0 %vm2869_vm5, %v2873_v53 }
 0x213   : > { %v771_v59 = vmax.f32 %v671_v54, %v769_v57  ;;  %v1800_v60 = vpop.f32.mrb[4].mxu0 }
 0x214   : > { %v751_v63 = vadd.f32 %v1800_v60, %v520_v35  ;;  %v745_v0 = vpop.f32.mrb[5].mxu0 }
 0x215   : > { %v2889_v3 = vpack.c.bf16 %v772_v58, %v771_v59  ;;  %v746_v4 = vadd.f32 %v745_v0, %v515_v36  ;;  %v491_v36 = vld [vmem:[%s3181_s28 + $0x8] sm:$0xff] }
 0x216   : > { %v778_v5 = vmul.f32 0.3, %v751_v63  ;;  %1003 = vperm.xlu0 %2119, %v490_v62  }
 0x217   : > { %v777_v7 = vmul.f32 0.3, %v746_v4  ;;  %1923 = vmatprep.subr.msk.bf16.mxu0 %vm2885_vm7, %v2889_v3 }
 0x218   : > { %v780_v9 = vmax.f32 %v751_v63, %v778_v5  ;;  %1926 = vmatpush3.bf16.msk.msra.mxu0 %vm2885_vm7, %v2889_v3 }
 0x219   : > { %v779_v10 = vmax.f32 %v746_v4, %v777_v7 }
 0x21a   : > { %v782_v11 = vsel %vm776_vm8, %v780_v9, 0.0  ;;  %1333 = vperm.xlu0 %2119, %v1245_v8  }
 0x21b   : > { %v781_v13 = vsel %vm776_vm8, %v779_v10, 0.0  ;;  %v2904_v14 = vpack.c.bf16 %v780_v9, %v779_v10 }
 0x21c   : > { %v2121_v15 = vpack.i.bf16 %v782_v11, %v781_v13 }
 0x21d   : > { %1929 = vmatprep.subr.msk.bf16.mxu0 %vm2900_vm9, %v2904_v14 }
 0x21e   : > { %1932 = vmatpush3.bf16.msk.msra.mxu0 %vm2900_vm9, %v2904_v14  ;;  %2122 = vrot.lane.b32.xlu1 %v2121_v15, %s2397_s29 }
 0x21f   : > { %1869 = vmatprep.subr.mxu0 %v2827_v18 }
 0x221   : > { %1847 = vmatmul.mubr.msk.f32.vlgmr.msra.gmra.mrb[8].mxu0 %vm1011_vm3, %v2916_v17 }
 0x222   : > { %1870 = vmatpush3.msra.mxu0 %v2827_v18  ;;  %1871 = vmatprep.mubr.msk.f32.mxu0 %vm1247_vm10, %v2922_v20 }
 0x229   : > { %1872 = vmatmul.mubr.msk.f32.vlgmr.msra.gmra.mrb[8].mxu0 %vm1247_vm10, %v2932_v21 }
 0x26b   : > { %v1818_v22 = vpop.f32.mrb[6].mxu0 }
 0x26c   : > { %v958_v18 = vadd.f32 %v1818_v22, %v2824_v16  ;;  %v952_v24 = vpop.f32.mrb[7].mxu0 }
 0x26d   : > { %v953_v25 = vadd.f32 %v952_v24, %v2834_v19 }
 0x26e   : > { %v962_v26 = vmul.f32 0.3, %v958_v18 }
 0x26f   : > { %v961_v27 = vmul.f32 0.3, %v953_v25 }
 0x270   : > { %v964_v30 = vmax.f32 %v958_v18, %v962_v26 }
 0x271   : > { %v963_v32 = vmax.f32 %v953_v25, %v961_v27 }
 0x272   : > { %v972_v33 = vsel %vm970_vm11, 0.0, %v964_v30 }
 0x273   : > { %v971_v34 = vsel %vm970_vm11, 0.0, %v963_v32 }
 0x274   : > { %v2131_v35 = vpack.i.bf16 %v972_v33, %v971_v34 }
 0x275   : > { %v1809_v28 = vpop.f32.mrb[0].mxu1 }
 0x276   : > { %v856_v31 = vpop.f32.mrb[1].mxu1  ;;  %2132 = vrot.lane.b32.xlu1 %v2131_v35, %s2396_s19  ;;  %v862_v38 = vadd.f32 %v1809_v28, %v2824_v16  ;;  %s3189_s19 = sld [smem:[#allocation17_spill]] }
 0x277   : > { %v857_v39 = vadd.f32 %v856_v31, %v2834_v19 }
 0x278   : > { %v866_v40 = vmul.f32 0.3, %v862_v38 }
 0x279   : > { %v865_v41 = vmul.f32 0.3, %v857_v39 }
 0x27a   : > { %1008 = vperm.xlu1 %2120, %v491_v36   ;;  %v868_v43 = vmax.f32 %v862_v38, %v866_v40 }
 0x27b   : > { %v867_v44 = vmax.f32 %v857_v39, %v865_v41 }
 0x27c   : > { %v876_v45 = vsel %vm874_vm12, 0.0, %v868_v43  ;;  %s1712_s5 = sshll.u32 %s3189_s19, 2  ;;  %s2239_s19 = scalar_lea.vmem %s2238_s27, 512 }
 0x27d   : > { %v875_v46 = vsel %vm874_vm12, 0.0, %v867_v44  ;;  %s1519_s29 = sadd.s32 %s3173_s25, %s1712_s5  ;;  %p2241_p11 = scmp.lt.s32.totalorder %s2239_s19, %s2233_s14 }
 0x27e   : > { %1338 = vperm.xlu1 %2120, %v1246_v37   ;;  %s1713_s20 = sshll.u32 %s1519_s29, 7 }
 0x27f   : > { %s3006_s15 = scalar_lea.hbm %s3190_s30, %s1713_s20  ;;  %p2242_p10 = por %p2241_p11, %p2240_p7 }
 0x281   : > { %p2243_p2 = pnand %p2242_p10, %p2236_p5 }
 0x284   : > { %v2128_v19 = vpop.permute.xlu0 %2127 }
 0x285   : > { %v2129_v54 = vunpack.i.l.bf16 %v2128_v19 }
 0x290   : > { %v2123_v47 = vpop.permute.xlu1 %2122 }
 0x291   : > { %v2125_v48 = vunpack.i.h.bf16 %v2123_v47  ;;  %v2124_v49 = vunpack.i.l.bf16 %v2123_v47 }
 0x293   : > { %v981_v50 = vsel %vm500_vm1, %v875_v46, %v2124_v49  ;;  %v982_v52 = vsel %vm500_vm1, %v876_v45, %v2125_v48 }
 0x294   : > { %v1899_v16 = vpack.c.bf16 %v982_v52, %v981_v50 }
 0x295   : > { %v1004_v61 = vpop.permute.xlu0 %1003 }
 0x296   : > { %1900 = vmatprep.subr.bf16.mxu1 %v1899_v16 }
 0x297   : > { %1902 = vmatpush3.bf16.msra.mxu1 %v1899_v16 }
 0x298   : > { %1905 = vmatprep.subr.msk.bf16.mxu1 %vm2869_vm5, %v2873_v53 }
 0x299   : > { %v1334_v7 = vpop.permute.xlu0 %1333 }
 0x29b   : > { %1908 = vmatpush3.bf16.msk.msra.mxu1 %vm2869_vm5, %v2873_v53  ;;  %v2130_v53 = vunpack.i.h.bf16 %v2128_v19 }
 0x29c   : > { %1911 = vmatprep.subr.msk.bf16.mxu1 %vm2885_vm7, %v2889_v3 }
 0x29f   : > { %1914 = vmatpush3.bf16.msk.msra.mxu1 %vm2885_vm7, %v2889_v3 }
 0x2a0   : > { %1935 = vmatprep.subr.msk.bf16.mxu1 %vm2885_vm7, %v2889_v3 }
 0x2a2   : > { %1832 = vmatmul.mubr.msk.f32.vlgmr.msra.gmra.mrb[2].mxu1 %vm1011_vm3, %v2916_v17 }
 0x2a3   : > { %1938 = vmatpush3.bf16.msk.msra.mxu1 %vm2885_vm7, %v2889_v3  ;;  %1861 = vmatprep.mubr.msk.f32.mxu1 %vm1011_vm3, %v2858_v29 }
 0x2a4   : > { %1941 = vmatprep.subr.msk.bf16.mxu1 %vm2900_vm9, %v2904_v14 }
 0x2a7   : > { %1944 = vmatpush3.bf16.msk.msra.mxu1 %vm2900_vm9, %v2904_v14 }
 0x2e8   : > { %v2133_v51 = vpop.permute.xlu1 %2132 }
 0x2e9   : > { %v2135_v55 = vunpack.i.h.bf16 %v2133_v51  ;;  %v2134_v56 = vunpack.i.l.bf16 %v2133_v51 }
 0x2eb   : > { %v999_v57 = vsel %vm510_vm2, %v2129_v54, %v2134_v56  ;;  %v1000_v58 = vsel %vm510_vm2, %v2130_v53, %v2135_v55 }
 0x2ec   : > { %v1945_v59 = vpack.c.bf16 %v1000_v58, %v999_v57 }
 0x2ee   : > { %1946 = vmatprep.subr.bf16.mxu1 %v1945_v59 }
 0x2ef   : > { %1948 = vmatpush3.bf16.msra.mxu1 %v1945_v59 }
 0x2f0   : > { %1864 = vmatprep.subr.mxu1 %v2810_v6 }
 0x2f2   : > { %1862 = vmatmul.mubr.msk.f32.vlgmr.msra.gmra.mrb[4].mxu1 %vm1011_vm3, %v2916_v17 }
 0x2f3   : > { %1865 = vmatpush3.msra.mxu1 %v2810_v6  ;;  %1866 = vmatprep.mubr.msk.f32.mxu1 %vm1247_vm10, %v2922_v20 }
 0x2f4   : > { %1874 = vmatprep.subr.mxu1 %v2796_v1 }
 0x2f6   : > { %1867 = vmatmul.mubr.msk.f32.vlgmr.msra.gmra.mrb[2].mxu1 %vm1247_vm10, %v2932_v21 }
 0x2f7   : > { %1875 = vmatpush3.msra.mxu1 %v2796_v1  ;;  %1876 = vmatprep.mubr.msk.f32.mxu1 %vm1247_vm10, %v2922_v20 }
 0x2f9   : > { %v1009_v6 = vpop.permute.xlu1 %1008 }
 0x2fa   : > { %1877 = vmatmul.mubr.msk.f32.vlgmr.msra.gmra.mrb[4].mxu1 %vm1247_vm10, %v2932_v21 }
 0x2fc   : > { %v1873_v29 = vpop.f32.mrb[8].mxu0 }
 0x2fd   : > { %v1409_v60 = vpop.f32.mrb[9].mxu0  ;;  %v1339_v63 = vpop.permute.xlu1 %1338  ;;  %v1951_v2 = vadd.f32 %v1873_v29, %v1009_v6 }
 0x2fe   : > { %v1952_v62 = vadd.f32 %v1409_v60, %v1004_v61 }
 0x2ff   : > { %v1421_v1 = vadd.f32 %v1951_v2, %v1339_v63 }
 0x300   : > { %v1420_v9 = vadd.f32 %v1952_v62, %v1334_v7 }
 0x3c9   : > { %v1868_v0 = vpop.f32.mrb[2].mxu1 }
 0x3ca   : > { %v1949_v3 = vadd.f32 %v1868_v0, %v1009_v6  ;;  %v1320_v4 = vpop.f32.mrb[3].mxu1 }
 0x3cb   : > { %v1950_v5 = vadd.f32 %v1320_v4, %v1004_v61 }
 0x3cc   : > { %v1342_v8 = vadd.f32 %v1949_v3, %v1339_v63 }
 0x3cd   : > { %v1341_v10 = vadd.f32 %v1950_v5, %v1334_v7  ;;  %v1878_v11 = vpop.f32.mrb[4].mxu1 }
 0x3ce   : > { %v1502_v12 = vmax.f32 %v1342_v8, %v1421_v1  ;;  %v1953_v13 = vadd.f32 %v1878_v11, %v1009_v6  ;;  %v1488_v14 = vpop.f32.mrb[5].mxu1 }
 0x3cf   : > { %v1501_v15 = vmax.f32 %v1341_v10, %v1420_v9  ;;  %v1954_v17 = vadd.f32 %v1488_v14, %v1004_v61 }
 0x3d0   : > { %v1500_v20 = vadd.f32 %v1953_v13, %v1339_v63 }
 0x3d1   : > { %v1499_v21 = vadd.f32 %v1954_v17, %v1334_v7 }
 0x3d2   : > { %v1504_v22 = vmax.f32 %v1502_v12, %v1500_v20 }
 0x3d3   : > { %v1503_v18 = vmax.f32 %v1501_v15, %v1499_v21 }
 0x3d4   : > { %1506 = vst [vmem:[%s462_s9 + $0x8] sm:$0xff] %v1504_v22 }
 0x3d5   : > { %1505 = vst [vmem:[%s462_s9] sm:$0xff] %v1503_v18 }
 0x3d6   : > { %2246 = shalt.err (!%p2243_p2)
}
 0x3d7   : > { %s2247_s0 = scalar_lea.hbm %s3006_s15, 256  ;;  %s2251_s9 = scalar_lea.hbm %s3191_s23, 1024 }
 0x3d8   : > { %p2248_p6 = scmp.ne.s32.totalorder %s3006_s15, %s2247_s0  ;;  %p2252_p8 = scmp.lt.u32.totalorder %s3006_s15, %s3191_s23 }
 0x3d9   : > { %p2253_p1 = scmp.lt.u32.totalorder %s2251_s9, %s2247_s0  ;;  %p2255_p13 = scmp.lt.u32.totalorder %s2247_s0, %s3006_s15 }
 0x3da   : > { %p2249_p0 = pnand %p2248_p6, %p3192_p12 }
 0x3db   : > { %p2254_p4 = por %p2253_p1, %p2252_p8 }
 0x3dc   : > { %p2250_p3 = pneg %p2249_p0 }
 0x3dd   : > { %p2256_p9 = por %p2255_p13, %p2254_p4 }
 0x3df   : > { %p2257_p5 = pnand %p2256_p9, %p2250_p3 }
 0x3e1   : > { %2260 = shalt.err (!%p2257_p5)
}
 0x3e2   : > { %s2400_s18 = smov 128   ;;  %s2401_s30 = smov 256  }
 0x3e3   : > { %s2402_s14 = smov 8  }
 0x3e4   : > { %1975 = dma.vmem_to_hbm [thread:$0]  (%p3192_p12), %s3001_s17, 256, %s3006_s15, %s1508_s12, %s2400_s18, %s2401_s30, %s2402_s14  }
 0x3e5 PF: > { %s3193_s3 = sld [smem:[#allocation14_spill]]  ;;  %s3194_s27 = sld [smem:[#allocation24_spill]] }
 0x3e6   : > { %p1992_p7 = scmp.ge.s32.totalorder %s2388_s22, 2 }
 0x3eb   : > { %s1537_s19 = sand.u32 1, %s3193_s3   ;;  %p3195_p11 = scmp.ne.s32.totalorder %s3194_s27, 0 }
 0x3ec   : > { %s1538_s0 = scalar_lea.sflag [#allocation4], %s1537_s19 }
 0x3ed   : > { %p1988_p10 = pnand %p1992_p7, %p3195_p11 }
 0x3ef   : > { %2330 = dma.done.wait (!%p1988_p10), %s1538_s0, 256  }
 0x3f0   : > { %2332 = vsyncadd (!%p1988_p10), %s1538_s0, 4294967040  ;;  %s28_s22 = sadd.s32 1, %s2388_s22   ;;  %s3197_s26 = sld [smem:[#allocation13_spill]] }
 0x3f1   : > { %p3037_p2 = scmp.ge.s32.totalorder %s28_s22, 6   ;;  %s3198_s14 = sld [smem:[#allocation22_spill]] }
 0x3f2   : > { %s3199_s21 = sld [smem:[#allocation15_spill]]  ;;  %s3200_s17 = sld [smem:[#allocation23_spill]] }
 0x3f3   : > { %s3201_s18 = sld [smem:[#allocation18_spill]]  ;;  %s3202_s19 = sld [smem:[#allocation19_spill]] }
 0x3f4   : > { %s3203_s20 = sld [smem:[#allocation20_spill]]  ;;  %s3204_s29 = sld [smem:[#allocation21_spill]] }
 0x3f5   : > { %s3205_s30 = smov %s2340_s10  ;;  %s3206_s10 = smov %s2344_s11 }
 0x3f6   : > { %s3207_s11 = smov %s2707_s24  ;;  %s3208_s12 = smov %s2352_s13 }
 0x3f7   : > { %s3209_s13 = smov %s3197_s26  ;;  %s3210_s15 = smov %s2364_s16 }
 0x3f8   : > { %s3211_s16 = smov %s3199_s21  ;;  %27 = sbr.rel (!%p3037_p2) target bundleno = 22 (0x16), region = 128 }
 0x3fa   : > { %s3212_s21 = smov %s3204_s29 }
 0x3ff   :  { %1543 = vsyncpa [#allocation3], 1 }
 0x400   :  { %1545 = vsyncpa [#allocation3 + $0x1], 1 }
 0x401   :  { %1546 = vsyncpa [#allocation6], 1 }
 0x402   :  { %1548 = vsyncpa [#allocation6 + $0x1], 1 }
 0x403   :  { %1549 = vsyncpa [#allocation4], 1 }
 0x404   :  { %1551 = vsyncpa [#allocation4 + $0x1], 1 }

</bundles_post_ra>
